<compile_context>
chip_gen: v7x
topology: tpu7x:2x2x1
jax: 0.10.0
libtpu: 0.0.40
codegen_flags: <defaults>
</compile_context>

<pallas_src>
import math

import jax
import jax.numpy as jnp
from jax.experimental import pallas as pl
from jax.experimental.pallas import tpu as pltpu


def _round_up(x, m):
    return ((x + m - 1) // m) * m


# ---------------------------------------------------------------------------
# Kernels
# ---------------------------------------------------------------------------
def _eql_kernel_inplace(x_ref, w_ref, b_ref, o_ref):
    """f32-output path: accumulate directly into the resident output tile."""
    k = pl.program_id(2)

    @pl.when(k == 0)
    def _():
        o_ref[...] = jnp.zeros_like(o_ref)

    # Weight tile is already scaled (equal-LR) and in (K, N) layout.
    o_ref[...] += jnp.dot(x_ref[...], w_ref[...],
                          preferred_element_type=jnp.float32)

    @pl.when(k == pl.num_programs(2) - 1)
    def _():
        o_ref[...] = o_ref[...] + b_ref[...]


def _eql_kernel_acc(x_ref, w_ref, b_ref, o_ref, acc_ref):
    """Mixed-precision path (e.g. bf16 inputs): f32 VMEM accumulator."""
    k = pl.program_id(2)

    @pl.when(k == 0)
    def _():
        acc_ref[...] = jnp.zeros_like(acc_ref)

    acc_ref[...] += jnp.dot(x_ref[...], w_ref[...],
                            preferred_element_type=jnp.float32)

    @pl.when(k == pl.num_programs(2) - 1)
    def _():
        o_ref[...] = (acc_ref[...] + b_ref[...]).astype(o_ref.dtype)


# ---------------------------------------------------------------------------
# Module-style wrapper: weight prep happens ONCE at construction time.
# ---------------------------------------------------------------------------
class EqualLRLinearPallas:
    """Holds the pre-transposed / pre-padded / pre-scaled weight (like module init)."""

    def __init__(self, weight_orig, bias, *, compute_dtype=jnp.float32,
                 tm_cap=None, tn_cap=512, tk_cap=None):
        out_dim, in_dim = weight_orig.shape
        assert bias.shape == (out_dim,)
        self.in_dim = int(in_dim)
        self.out_dim = int(out_dim)
        self.compute_dtype = compute_dtype

        is_f32 = (compute_dtype == jnp.float32)
        self.tm_cap = tm_cap if tm_cap is not None else (256 if is_f32 else 512)
        if tk_cap is None:
            tk_cap = 1024 if is_f32 else 2048

        # --- K tiling: single full-K step when it fits, else tk_cap-wide steps.
        if in_dim <= tk_cap:
            self.tk = in_dim            # block == full dim -> always legal, no pad
            self.Kp = in_dim
        else:
            self.tk = tk_cap            # multiple of 128
            self.Kp = _round_up(in_dim, self.tk)

        # --- N tiling: lane-dense (multiple of 128) output tiles.
        n128 = _round_up(out_dim, 128)
        if n128 <= tn_cap:
            self.tn = n128
            self.Np = n128
        else:
            self.tn = tn_cap            # 512 -> multiple of 256, fills v6e/v7x MXU
            self.Np = _round_up(out_dim, self.tn)

        # --- One-time weight prep: fold equal-LR scale (in f32, before any
        # narrowing cast), transpose to (K, N), pad to (Kp, Np).
        scale = math.sqrt(2.0 / in_dim)   # fan_in of the ORIGINAL layer
        w_scaled_t = (weight_orig.astype(jnp.float32) * scale).T
        w_scaled_t = w_scaled_t.astype(compute_dtype)
        if (self.Kp, self.Np) != (in_dim, out_dim):
            w_t = jnp.zeros((self.Kp, self.Np), compute_dtype)
            w_t = w_t.at[:in_dim, :out_dim].set(w_scaled_t)
        else:
            w_t = w_scaled_t
        self.w_t = w_t

        b = bias.astype(jnp.float32).reshape(1, out_dim)
        if self.Np != out_dim:
            b = jnp.zeros((1, self.Np), jnp.float32).at[:, :out_dim].set(b)
        self.bias = b

    def __call__(self, x):
        B, in_dim = x.shape
        assert in_dim == self.in_dim
        out_dtype = x.dtype

        tm = min(_round_up(B, 8), self.tm_cap)
        Mp = _round_up(B, tm)

        # Conditional padding / cast of the activation (skip the HBM copy when
        # shapes already line up and dtype already matches).
        xk = x if x.dtype == self.compute_dtype else x.astype(self.compute_dtype)
        if (Mp, self.Kp) != (B, in_dim):
            x_p = jnp.zeros((Mp, self.Kp), self.compute_dtype)
            x_p = x_p.at[:B, :in_dim].set(xk)
        else:
            x_p = xk

        use_inplace = (self.compute_dtype == jnp.float32
                       and out_dtype == jnp.float32)
        kernel = _eql_kernel_inplace if use_inplace else _eql_kernel_acc
        scratch = [] if use_inplace else [pltpu.VMEM((tm, self.tn), jnp.float32)]

        grid = (Mp // tm, self.Np // self.tn, self.Kp // self.tk)

        out_p = pl.pallas_call(
            kernel,
            out_shape=jax.ShapeDtypeStruct((Mp, self.Np), out_dtype),
            grid_spec=pltpu.PrefetchScalarGridSpec(
                num_scalar_prefetch=0,
                grid=grid,
                in_specs=[
                    pl.BlockSpec((tm, self.tk), lambda i, j, k: (i, k)),  # x
                    pl.BlockSpec((self.tk, self.tn), lambda i, j, k: (k, j)),  # W^T (scaled)
                    pl.BlockSpec((1, self.tn), lambda i, j, k: (0, j)),   # bias
                ],
                out_specs=pl.BlockSpec((tm, self.tn), lambda i, j, k: (i, j)),
                scratch_shapes=scratch,
            ),
            compiler_params=pltpu.CompilerParams(
                dimension_semantics=("parallel", "parallel", "arbitrary")),
        )(x_p, self.w_t, self.bias)

        if (Mp, self.Np) != (B, self.out_dim):
            return out_p[:B, :self.out_dim]
        return out_p


def equal_lr_linear(x, weight_orig, bias, *, compute_dtype=jnp.float32):
    """Functional convenience wrapper (prefer EqualLRLinearPallas to amortize prep)."""
    return EqualLRLinearPallas(weight_orig, bias, compute_dtype=compute_dtype)(x)


def equal_lr_linear_ref(x, weight_orig, bias):
    scale = math.sqrt(2.0 / weight_orig.shape[1])
    return x @ (weight_orig * scale).T + bias


if __name__ == "__main__":
    key = jax.random.PRNGKey(0)
    k1, k2, k3, k4, k5, k6 = jax.random.split(key, 6)

    # Case 1: small shapes matching the module demo.
    # tk == in_dim (no K pad), tn padded 64 -> 128 for lane-dense stores.
    B1, in1, out1 = 8, 32, 64
    w1 = jax.random.normal(k1, (out1, in1), dtype=jnp.float32)  # weight.data.normal_()
    b1 = jnp.zeros((out1,), dtype=jnp.float32)                  # bias.data.zero_()
    x1 = jax.random.normal(k2, (B1, in1), dtype=jnp.float32)

    layer1 = EqualLRLinearPallas(w1, b1)
    y1 = jax.block_until_ready(layer1(x1))
    r1 = equal_lr_linear_ref(x1, w1, b1)
    assert y1.shape == (B1, out1)
    assert jnp.allclose(y1, r1, atol=1e-4, rtol=1e-5), "mismatch vs reference (case 1)"

    # Case 2: exercises the tiled grid with K accumulation directly into the
    # resident f32 output tile (grid = (1, 1, 2): tm=16, tn=512, tk=1024).
    B2, in2, out2 = 16, 2048, 512
    w2 = jax.random.normal(k3, (out2, in2), dtype=jnp.float32)
    b2 = jnp.zeros((out2,), dtype=jnp.float32)
    x2 = jax.random.normal(k4, (B2, in2), dtype=jnp.float32)

    layer2 = EqualLRLinearPallas(w2, b2)
    y2 = jax.block_until_ready(layer2(x2))
    r2 = equal_lr_linear_ref(x2, w2, b2)
    assert y2.shape == (B2, out2)
    assert jnp.allclose(y2, r2, atol=1e-4, rtol=1e-5), "mismatch vs reference (case 2)"

    # Case 3: bf16 compute path (scale folded into weight before the bf16 cast,
    # f32 VMEM accumulator, f32 output) -> looser tolerance.
    B3, in3, out3 = 16, 512, 256
    w3 = jax.random.normal(k5, (out3, in3), dtype=jnp.float32)
    b3 = jnp.zeros((out3,), dtype=jnp.float32)
    x3 = jax.random.normal(k6, (B3, in3), dtype=jnp.float32)

    layer3 = EqualLRLinearPallas(w3, b3, compute_dtype=jnp.bfloat16)
    y3 = jax.block_until_ready(layer3(x3))
    r3 = equal_lr_linear_ref(x3, w3, b3)
    assert y3.shape == (B3, out3)
    assert jnp.allclose(y3, r3, atol=5e-2, rtol=5e-2), "mismatch vs reference (case 3, bf16)"

    print("KERNEL_OK")
</pallas_src>

<mosaic_0001>
module attributes {stable_mosaic.version = 11 : i64} {
  func.func @_eql_kernel_inplace(%arg0: i32, %arg1: i32, %arg2: i32, %arg3: memref<8x32xf32, #tpu.memory_space<vmem>>, %arg4: memref<32x128xf32, #tpu.memory_space<vmem>>, %arg5: memref<1x128xf32, #tpu.memory_space<vmem>>, %arg6: memref<8x128xf32, #tpu.memory_space<vmem>>) attributes {dimension_semantics = [#tpu.dimension_semantics<parallel>, #tpu.dimension_semantics<parallel>, #tpu.dimension_semantics<arbitrary>], iteration_bounds = array<i64: 1, 1, 1>, scalar_prefetch = 0 : i64, scratch_operands = 0 : i64, tpu.core_type = #tpu.core_type<tc>, window_params = [{transform_indices = @transform_0, window_bounds = array<i64: 8, 32>}, {transform_indices = @transform_1, window_bounds = array<i64: 32, 128>}, {transform_indices = @transform_2, window_bounds = array<i64: 1, 128>}, {transform_indices = @transform_3, window_bounds = array<i64: 8, 128>}]} {
    %c0_i32 = arith.constant 0 : i32
    %0 = arith.cmpi eq, %arg2, %c0_i32 : i32
    %1 = arith.extui %0 : i1 to i32
    %c0_i32_0 = arith.constant 0 : i32
    %2 = arith.cmpi ne, %1, %c0_i32_0 : i32
    scf.if %2 {
      %cst_10 = arith.constant 0.000000e+00 : f32
      %12 = vector.broadcast %cst_10 : f32 to vector<8x128xf32>
      %c0_11 = arith.constant 0 : index
      %c0_12 = arith.constant 0 : index
      %13 = vector.load %arg6[%c0_11, %c0_12] : memref<8x128xf32, #tpu.memory_space<vmem>>, vector<8x128xf32>
      tpu.vector_store %arg6[%c0_11, %c0_12], %12 {strides = array<i32>} : memref<8x128xf32, #tpu.memory_space<vmem>>, vector<8x128xf32>,
    } else {
    }
    %c0 = arith.constant 0 : index
    %c0_1 = arith.constant 0 : index
    %3 = vector.load %arg6[%c0, %c0_1] : memref<8x128xf32, #tpu.memory_space<vmem>>, vector<8x128xf32>
    %c0_2 = arith.constant 0 : index
    %c0_3 = arith.constant 0 : index
    %4 = vector.load %arg3[%c0_2, %c0_3] : memref<8x32xf32, #tpu.memory_space<vmem>>, vector<8x32xf32>
    %c0_4 = arith.constant 0 : index
    %c0_5 = arith.constant 0 : index
    %5 = vector.load %arg4[%c0_4, %c0_5] : memref<32x128xf32, #tpu.memory_space<vmem>>, vector<32x128xf32>
    %cst = arith.constant dense<0.000000e+00> : vector<8x128xf32>
    %6 = tpu.matmul %4, %5, %cst {dimension_numbers = #tpu.dot_dimension_numbers<[1], [0], [0], [1], [0, 0, 1, 1], [], []>} : vector<8x32xf32>, vector<32x128xf32>, vector<8x128xf32> -> vector<8x128xf32>
    %7 = arith.addf %3, %6 : vector<8x128xf32>
    %c0_6 = arith.constant 0 : index
    %c0_7 = arith.constant 0 : index
    %8 = vector.load %arg6[%c0_6, %c0_7] : memref<8x128xf32, #tpu.memory_space<vmem>>, vector<8x128xf32>
    tpu.vector_store %arg6[%c0_6, %c0_7], %7 {strides = array<i32>} : memref<8x128xf32, #tpu.memory_space<vmem>>, vector<8x128xf32>,
    %c0_i32_8 = arith.constant 0 : i32
    %9 = arith.cmpi eq, %arg2, %c0_i32_8 : i32
    %10 = arith.extui %9 : i1 to i32
    %c0_i32_9 = arith.constant 0 : i32
    %11 = arith.cmpi ne, %10, %c0_i32_9 : i32
    scf.if %11 {
      %c0_10 = arith.constant 0 : index
      %c0_11 = arith.constant 0 : index
      %12 = vector.load %arg6[%c0_10, %c0_11] : memref<8x128xf32, #tpu.memory_space<vmem>>, vector<8x128xf32>
      %c0_12 = arith.constant 0 : index
      %c0_13 = arith.constant 0 : index
      %13 = vector.load %arg5[%c0_12, %c0_13] : memref<1x128xf32, #tpu.memory_space<vmem>>, vector<1x128xf32>
      %14 = vector.broadcast %13 : vector<1x128xf32> to vector<8x128xf32>
      %15 = arith.addf %12, %14 : vector<8x128xf32>
      %c0_14 = arith.constant 0 : index
      %c0_15 = arith.constant 0 : index
      %16 = vector.load %arg6[%c0_14, %c0_15] : memref<8x128xf32, #tpu.memory_space<vmem>>, vector<8x128xf32>
      tpu.vector_store %arg6[%c0_14, %c0_15], %15 {strides = array<i32>} : memref<8x128xf32, #tpu.memory_space<vmem>>, vector<8x128xf32>,
    } else {
    }
    return
  }
  func.func @transform_0(%arg0: i32, %arg1: i32, %arg2: i32) -> (i32, i32) {
    %c0_i32 = arith.constant 0 : i32
    return %arg0, %arg2 : i32, i32
  }
  func.func @transform_1(%arg0: i32, %arg1: i32, %arg2: i32) -> (i32, i32) {
    %c0_i32 = arith.constant 0 : i32
    return %arg2, %arg1 : i32, i32
  }
  func.func @transform_2(%arg0: i32, %arg1: i32, %arg2: i32) -> (i32, i32) {
    %c0_i32 = arith.constant 0 : i32
    %c0_i32_0 = arith.constant 0 : i32
    return %c0_i32, %arg1 : i32, i32
  }
  func.func @transform_3(%arg0: i32, %arg1: i32, %arg2: i32) -> (i32, i32) {
    %c0_i32 = arith.constant 0 : i32
    return %arg0, %arg1 : i32, i32
  }
}

</mosaic_0001>

<bundles_post_ra>
// kernel: tpu_custom_call.1
= control target key start
LH: loop header
LB: loop body
LE: loop exit
PB: predicated region body
PF: predicated region fallthrough
CT: control target
= control target key end

     0   :  { %8 = vsyncpa [#allocation3], 0  ;;  %s335_s0 = inlined_call_operand.hbm [shape: f32[8,32], index: 0, kind: input, shape index: {}]   ;;  %s336_s1 = inlined_call_operand.hbm [shape: f32[32,128], index: 1, kind: input, shape index: {}]   ;;  %s337_s2 = inlined_call_operand.vmem [shape: f32[1,128], index: 2, kind: input, shape index: {}]   ;;  %s338_s3 = inlined_call_operand.hbm [shape: f32[8,128], index: 3, kind: output, shape index: {}]  }
   0x1   :  { %9 = vsyncpa [#allocation6], 0 }
   0x2   :  { %10 = vsyncpa [#allocation4], 0  ;;  %s261_s12 = smov [#allocation2]   ;;  %s262_s14 = smov [#allocation5]  }
   0x3   :  { %s17_s13 = sshll.u32 %s261_s12, 4  ;;  %s26_s15 = sshll.u32 %s262_s14, 4  ;;  %s18_s13 = int_to_ptr.vmem [resolvable:$true] %s17_s13  ;;  %s289_s15 = int_to_ptr.vmem [resolvable:$true] %s26_s15 }
   0x4   :  { %s189_s18 = scalar_lea.hbm %s335_s0, 128 }
   0x5   :  { %p190_p0 = scmp.ne.s32.totalorder %s335_s0, %s189_s18  ;;  %p193_p1 = scmp.lt.u32.totalorder %s189_s18, %s335_s0 }
   0x7   :  { %p195_p2 = pnand %p193_p1, %p190_p0 }
   0x9   :  { %198 = shalt.err (!%p195_p2)
}
   0xa   :  { %s199_s23 = scalar_lea.vmem %s18_s13, 128  ;;  %p204_p4 = scmp.lt.s32.totalorder %s18_s13, %s18_s13 }
   0xb   :  { %p200_p3 = scmp.ne.s32.totalorder %s18_s13, %s199_s23  ;;  %p205_p5 = scmp.lt.s32.totalorder %s199_s23, %s199_s23 }
   0xd   :  { %p206_p6 = por %p205_p5, %p204_p4 }
   0xf   :  { %p207_p7 = pnand %p206_p6, %p200_p3 }
  0x11   :  { %210 = shalt.err (!%p207_p7)
}
  0x12   :  { %20 = dma.hbm_to_vmem [thread:$0]  %s335_s0, 128, %s18_s13, [#allocation3]  }
  0x13   :  { %s211_s28 = scalar_lea.hbm %s336_s1, 512 }
  0x14   :  { %p212_p8 = scmp.ne.s32.totalorder %s336_s1, %s211_s28  ;;  %p215_p9 = scmp.lt.u32.totalorder %s211_s28, %s336_s1 }
  0x16   :  { %p217_p10 = pnand %p215_p9, %p212_p8 }
  0x18   :  { %220 = shalt.err (!%p217_p10)
}
  0x19   :  { %s221_s6 = scalar_lea.vmem %s289_s15, 512  ;;  %p226_p12 = scmp.lt.s32.totalorder %s289_s15, %s289_s15 }
  0x1a   :  { %p222_p11 = scmp.ne.s32.totalorder %s289_s15, %s221_s6  ;;  %p227_p13 = scmp.lt.s32.totalorder %s221_s6, %s221_s6 }
  0x1c   :  { %p228_p0 = por %p227_p13, %p226_p12 }
  0x1e   :  { %p229_p1 = pnand %p228_p0, %p222_p11 }
  0x20   :  { %232 = shalt.err (!%p229_p1)
}
  0x21   :  { %s263_s0 = smov 128   ;;  %s264_s7 = smov 8  }
  0x22   :  { %32 = dma.hbm_to_vmem [thread:$0]  %s336_s1, 512, %s289_s15, [#allocation6], %s263_s0, %s263_s0, %s264_s7  }
  0x23   :  { %255 = dma.done.wait [#allocation3], 128  }
  0x24   :  { %256 = vsyncadd [#allocation3], 4294967168 }
  0x25   :  { %257 = dma.done.wait [#allocation6], 512  }
  0x26   :  { %258 = vsyncadd [#allocation6], 4294966784  ;;  %v265_v0 = vmov 0.0|0.0   ;;  %vm266_vm0 = vmmov 0   ;;  %v267_v1 = vmov 0.0   ;;  %v48_v2 = vld [vmem:[#allocation5] sm:$0xff] }
  0x27   :  { %175 = vmatprep.subr.bf16.mxu0 %v265_v0  ;;  %172 = vmatprep.mubr.msk.f32.mxu0 %vm266_vm0, %v267_v1  ;;  %v49_v3 = vld [vmem:[#allocation5 + $0x8] sm:$0xff]  ;;  %v50_v4 = vld [vmem:[#allocation5 + $0x10] sm:$0xff]  ;;  %v51_v6 = vld [vmem:[#allocation5 + $0x18] sm:$0xff]  ;;  %vm52_vm1 = vcmask 261120   ;;  %s268_s11 = smov [#allocation7]  }
  0x28   :  { %v176_v5 = vpack.c.bf16 %v49_v3, %v48_v2  ;;  %v179_v7 = vpack.c.bf16 %v51_v6, %v50_v4  ;;  %v47_v8 = vld [vmem:[#allocation2] sm:$0xff]  ;;  %s147_s12 = sshll.u32 %s268_s11, 4  ;;  %s148_s12 = int_to_ptr.vmem [resolvable:$true] %s147_s12 }
  0x29   :  { %v158_v10 = vld [vmem:[%s337_s2] ss:$0 sm:$0xff]  ;;  %s233_s13 = scalar_lea.vmem %s148_s12, 128  ;;  %p238_p3 = scmp.lt.s32.totalorder %s148_s12, %s148_s12 }
  0x2a   :  { %177 = vmatpush3.bf16.msra.mxu0 %v176_v5  ;;  %p234_p2 = scmp.ne.s32.totalorder %s148_s12, %s233_s13  ;;  %p239_p4 = scmp.lt.s32.totalorder %s233_s13, %s233_s13 }
  0x2b   :  { %178 = vmatprep.subr.bf16.mxu0 %v265_v0 }
  0x2c   :  { %p240_p5 = por %p239_p4, %p238_p3 }
  0x2e   :  { %180 = vmatpush3.bf16.msra.mxu0 %v179_v7  ;;  %p241_p6 = pnand %p240_p5, %p234_p2 }
  0x31   :  { %173 = vmatmul.mubr.msk.f32.vlgmr.msra.gmra.mrb[0].mxu0 %vm52_vm1, %v47_v8 }
 0x104   :  { %v122_v9 = vpop.f32.mrb[0].mxu0 }
 0x105   :  { %v174_v11 = vpop.f32.mrb[1].mxu0  ;;  %v139_v12 = vadd.f32 %v158_v10, %v122_v9 }
 0x107   :  { %140 = vst [vmem:[#allocation7] sm:$0xff] %v139_v12 }
 0x108   :  { %244 = shalt.err (!%p241_p6)
}
 0x109   :  { %s245_s16 = scalar_lea.hbm %s338_s3, 128 }
 0x10a   :  { %p246_p7 = scmp.ne.s32.totalorder %s338_s3, %s245_s16  ;;  %p249_p8 = scmp.lt.u32.totalorder %s245_s16, %s338_s3 }
 0x10c   :  { %p251_p9 = pnand %p249_p8, %p246_p7 }
 0x10e   :  { %254 = shalt.err (!%p251_p9)
}
 0x10f   :  { %150 = dma.vmem_to_hbm [thread:$0]  %s148_s12, 128, %s338_s3, [#allocation4]  }
 0x110   :  { %259 = dma.done.wait [#allocation4], 128  }
 0x111   :  { %260 = vsyncadd [#allocation4], 4294967168 }
 0x112   :  { %154 = vsyncpa [#allocation3], 1 }
 0x113   :  { %155 = vsyncpa [#allocation6], 1 }
 0x114   :  { %156 = vsyncpa [#allocation4], 1 }

</bundles_post_ra>
